<compile_context>
chip_gen: v6e
topology: v6e:2x2x1
jax: 0.10.0
libtpu: 0.0.40
codegen_flags: <defaults>
</compile_context>

<pallas_src>
import functools

import jax
import jax.numpy as jnp
from jax.experimental import pallas as pl
from jax.experimental.pallas import tpu as pltpu


def _round_up(x, m):
    return (x + m - 1) // m * m


def fm_kernel(x_ref, vcat_ref, b_ref, out_ref, *, num_fields, emb_k):
    # x_ref:    (TB, F)   batch tile of dense features (f32 or bf16)
    # vcat_ref: (F, W)    fused RHS: [v | v*mask_f ... | w^T | 0-pad], resident
    # b_ref:    (1, 1)    linear bias, SMEM scalar
    # out_ref:  (1, TB)   lane-dense output row (batch on lanes)
    x = x_ref[...]
    vcat = vcat_ref[...]
    b = b_ref[0, 0]

    # Single full-width MXU pass: columns 0..K-1 = sum_f emb_f, columns
    # (f+1)K..(f+2)K-1 = emb_f, column (NF+1)K = x @ W^T.
    p = jnp.dot(x, vcat, preferred_element_type=jnp.float32)        # (TB, W) f32

    # Go lane-dense: one aligned (TB, W) f32 transpose, then everything downstream
    # is sublane slices / sublane reductions producing (1, TB) rows.
    pt = jnp.transpose(p)                                            # (W, TB)
    qt = pt * pt                                                     # (W, TB)

    k = emb_k
    lin_row = (num_fields + 1) * k
    sq_of_sum = jnp.sum(qt[0:k, :], axis=0, keepdims=True)           # (1, TB)
    sum_of_sq = jnp.sum(qt[k:lin_row, :], axis=0, keepdims=True)     # (1, TB)
    linear = pt[lin_row:lin_row + 1, :]                              # (1, TB)

    out = linear + b + 0.5 * (sq_of_sum - sum_of_sq)
    out_ref[...] = out.astype(out_ref.dtype)


@functools.partial(jax.jit,
                   static_argnames=("feature_sizes", "block_b", "compute_dtype"))
def fm_forward(x, lin_w, lin_b, v, *, feature_sizes, block_b=512,
               compute_dtype=jnp.float32):
    """FM dense forward.

    x:        (B, F) dense features
    lin_w:    (1, F) nn.Linear(F, 1).weight
    lin_b:    (1,)   nn.Linear(F, 1).bias
    v:        (F, K) FM factor matrix
    feature_sizes: static tuple of per-field widths (partition of F)
    compute_dtype: dtype streamed into the MXU (f32; bf16 on v6e/v7x hardware for
                   the HBM-bandwidth roofline; accumulation/elementwise stay f32)
    """
    B, F = x.shape
    K = v.shape[1]
    NF = len(feature_sizes)
    assert sum(feature_sizes) == F, "field sizes must partition the feature axis"

    # ---- fused resident RHS: (F, W) with W a multiple of 128 lanes -------------
    cols = [v]
    off = 0
    for dim in feature_sizes:
        mask = jnp.zeros((F, 1), v.dtype).at[off:off + dim, :].set(1.0)
        cols.append(v * mask)                       # rows outside field f zeroed
        off += dim
    cols.append(lin_w.reshape(F, 1).astype(v.dtype))
    used = (NF + 1) * K + 1
    W = max(128, _round_up(used, 128))
    v_cat = jnp.concatenate(cols, axis=1)
    v_cat = jnp.pad(v_cat, ((0, 0), (0, W - used))).astype(compute_dtype)

    # ---- batch tiling: multiple of 128 (aligned in-kernel transpose), pad B ----
    tb = min(block_b, _round_up(B, 128))
    tb = _round_up(tb, 128)
    Bp = _round_up(B, tb)
    x_p = jnp.pad(x, ((0, Bp - B), (0, 0))).astype(compute_dtype)
    bias = lin_b.reshape(1, 1).astype(jnp.float32)
    n_tiles = Bp // tb

    kernel = functools.partial(fm_kernel, num_fields=NF, emb_k=K)

    out_row = pl.pallas_call(
        kernel,
        out_shape=jax.ShapeDtypeStruct((1, Bp), jnp.float32),
        grid_spec=pltpu.PrefetchScalarGridSpec(
            num_scalar_prefetch=0,
            grid=(n_tiles,),
            in_specs=[
                pl.BlockSpec((tb, F), lambda i: (i, 0)),     # streamed x batch tile
                pl.BlockSpec((F, W), lambda i: (0, 0)),      # fused RHS, resident
                pl.BlockSpec(memory_space=pltpu.MemorySpace.SMEM),  # bias scalar
            ],
            out_specs=pl.BlockSpec((1, tb), lambda i: (0, i)),      # lane-dense row
        ),
        compiler_params=pltpu.CompilerParams(
            dimension_semantics=("parallel",)),
    )(x_p, v_cat, bias)

    # layout plumbing only: (1, Bp) row -> (B, 1) column, drop batch padding
    return out_row.reshape(Bp, 1)[:B]


def fm_reference(x, lin_w, lin_b, v, feature_sizes):
    """Pure-JAX reference mirroring the PyTorch dense branch."""
    linear = x @ lin_w.reshape(-1, 1) + lin_b.reshape(1, 1)
    embs = []
    off = 0
    for dim in feature_sizes:
        embs.append(x[:, off:off + dim] @ v[off:off + dim])
        off += dim
    e = jnp.stack(embs)                          # (NF, B, K)
    square_of_sum = jnp.sum(e, axis=0) ** 2
    sum_of_square = jnp.sum(e ** 2, axis=0)
    interaction = 0.5 * jnp.sum(square_of_sum - sum_of_square, axis=1, keepdims=True)
    return linear + interaction


def xavier_uniform(key, shape):
    fan_out, fan_in = shape[0], shape[1]
    bound = (6.0 / (fan_in + fan_out)) ** 0.5
    return jax.random.uniform(key, shape, jnp.float32, -bound, bound)


if __name__ == "__main__":
    # Small synthetic config: 3 fields -> F = 48, embedding size K = 8.
    feature_dims = {"user": 16, "item": 24, "cat": 8}
    feature_sizes = tuple(feature_dims.values())
    embedding_size = 8
    F_total = sum(feature_sizes)
    batch = 200   # deliberately ragged: exercises batch padding + multi-tile grid

    key = jax.random.PRNGKey(0)
    kx, kw, kv = jax.random.split(key, 3)
    lin_w = xavier_uniform(kw, (1, F_total))            # nn.Linear(F,1).weight
    lin_b = jnp.zeros((1,), jnp.float32)                # deterministic bias
    v = xavier_uniform(kv, (F_total, embedding_size))   # self.v
    x = jax.random.normal(kx, (batch, F_total), jnp.float32)

    ref = fm_reference(x, lin_w, lin_b, v, feature_sizes)

    # f32 path, small tile -> grid of 2 (exercises index maps + batch padding).
    out = fm_forward(x, lin_w, lin_b, v, feature_sizes=feature_sizes,
                     block_b=128, compute_dtype=jnp.float32)
    jax.block_until_ready(out)
    assert out.shape == (batch, 1)
    assert jnp.allclose(out, ref, atol=1e-4, rtol=1e-4)

    # f32 path, single large tile (default block_b) -> grid of 1.
    out_big = fm_forward(x, lin_w, lin_b, v, feature_sizes=feature_sizes,
                         compute_dtype=jnp.float32)
    jax.block_until_ready(out_big)
    assert out_big.shape == (batch, 1)
    assert jnp.allclose(out_big, ref, atol=1e-4, rtol=1e-4)

    # NOTE: bf16 input streaming (compute_dtype=jnp.bfloat16) is supported by the
    # kernel on real TPU MXUs, but is intentionally not exercised here because the
    # CPU interpret backend cannot execute BF16 x BF16 -> F32 dots.

    print("KERNEL_OK")
</pallas_src>

<mosaic_0001>
module attributes {stable_mosaic.version = 11 : i64} {
  func.func @fm_kernel(%arg0: i32, %arg1: memref<128x48xf32, #tpu.memory_space<vmem>>, %arg2: memref<48x128xf32, #tpu.memory_space<vmem>>, %arg3: memref<1x1xf32, #tpu.memory_space<smem>>, %arg4: memref<1x128xf32, #tpu.memory_space<vmem>>) attributes {dimension_semantics = [#tpu.dimension_semantics<parallel>], iteration_bounds = array<i64: 2>, scalar_prefetch = 0 : i64, scratch_operands = 0 : i64, tpu.core_type = #tpu.core_type<tc>, window_params = [{transform_indices = @transform_0, window_bounds = array<i64: 128, 48>}, {pipeline_mode = #tpu.pipeline_mode<synchronous>, transform_indices = @transform_1, window_bounds = array<i64: 48, 128>}, {transform_indices = @transform_2, window_bounds = array<i64: 1, 1>}, {transform_indices = @transform_3, window_bounds = array<i64: 1, 128>}]} {
    %c0 = arith.constant 0 : index
    %c0_0 = arith.constant 0 : index
    %0 = vector.load %arg1[%c0, %c0_0] : memref<128x48xf32, #tpu.memory_space<vmem>>, vector<128x48xf32>
    %c0_1 = arith.constant 0 : index
    %c0_2 = arith.constant 0 : index
    %1 = vector.load %arg2[%c0_1, %c0_2] : memref<48x128xf32, #tpu.memory_space<vmem>>, vector<48x128xf32>
    %c0_3 = arith.constant 0 : index
    %c0_4 = arith.constant 0 : index
    %2 = memref.load %arg3[%c0_3, %c0_4] : memref<1x1xf32, #tpu.memory_space<smem>>
    %cst = arith.constant dense<0.000000e+00> : vector<128x128xf32>
    %3 = tpu.matmul %0, %1, %cst {dimension_numbers = #tpu.dot_dimension_numbers<[1], [0], [0], [1], [0, 0, 1, 1], [], []>} : vector<128x48xf32>, vector<48x128xf32>, vector<128x128xf32> -> vector<128x128xf32>
    %4 = tpu.transpose %3, [1, 0] : vector<128x128xf32> -> vector<128x128xf32>
    %5 = arith.mulf %4, %4 : vector<128x128xf32>
    %6 = vector.extract_strided_slice %5 {offsets = [0, 0], sizes = [8, 128], strides = [1, 1]} : vector<128x128xf32> to vector<8x128xf32>
    %cst_5 = arith.constant dense<0.000000e+00> : vector<128xf32>
    %7 = vector.multi_reduction <add>, %6, %cst_5 [0] : vector<8x128xf32> to vector<128xf32>
    %8 = vector.shape_cast %7 : vector<128xf32> to vector<1x128xf32>
    %9 = vector.extract_strided_slice %5 {offsets = [8, 0], sizes = [24, 128], strides = [1, 1]} : vector<128x128xf32> to vector<24x128xf32>
    %cst_6 = arith.constant dense<0.000000e+00> : vector<128xf32>
    %10 = vector.multi_reduction <add>, %9, %cst_6 [0] : vector<24x128xf32> to vector<128xf32>
    %11 = vector.shape_cast %10 : vector<128xf32> to vector<1x128xf32>
    %12 = vector.extract_strided_slice %4 {offsets = [32, 0], sizes = [1, 128], strides = [1, 1]} : vector<128x128xf32> to vector<1x128xf32>
    %13 = vector.broadcast %2 : f32 to vector<1x128xf32>
    %14 = arith.addf %12, %13 : vector<1x128xf32>
    %15 = arith.subf %8, %11 : vector<1x128xf32>
    %cst_7 = arith.constant 5.000000e-01 : f32
    %16 = vector.broadcast %cst_7 : f32 to vector<1x128xf32>
    %17 = arith.mulf %16, %15 : vector<1x128xf32>
    %18 = arith.addf %14, %17 : vector<1x128xf32>
    %c0_8 = arith.constant 0 : index
    %c0_9 = arith.constant 0 : index
    %19 = vector.load %arg4[%c0_8, %c0_9] : memref<1x128xf32, #tpu.memory_space<vmem>>, vector<1x128xf32>
    tpu.vector_store %arg4[%c0_8, %c0_9], %18 {strides = array<i32>} : memref<1x128xf32, #tpu.memory_space<vmem>>, vector<1x128xf32>,
    return
  }
  func.func @transform_0(%arg0: i32) -> (i32, i32) {
    %c0_i32 = arith.constant 0 : i32
    %c0_i32_0 = arith.constant 0 : i32
    return %arg0, %c0_i32 : i32, i32
  }
  func.func @transform_1(%arg0: i32) -> (i32, i32) {
    %c0_i32 = arith.constant 0 : i32
    %c0_i32_0 = arith.constant 0 : i32
    %c0_i32_1 = arith.constant 0 : i32
    return %c0_i32, %c0_i32_0 : i32, i32
  }
  func.func @transform_2(%arg0: i32) -> (i32, i32) {
    %c0_i32 = arith.constant 0 : i32
    %c0_i32_0 = arith.constant 0 : i32
    %c0_i32_1 = arith.constant 0 : i32
    return %c0_i32, %c0_i32_0 : i32, i32
  }
  func.func @transform_3(%arg0: i32) -> (i32, i32) {
    %c0_i32 = arith.constant 0 : i32
    %c0_i32_0 = arith.constant 0 : i32
    return %c0_i32, %arg0 : i32, i32
  }
}

</mosaic_0001>

<bundles_post_ra>
// kernel: fm_forward.1
= control target key start
LH: loop header
LB: loop body
LE: loop exit
PB: predicated region body
PF: predicated region fallthrough
CT: control target
= control target key end

     0   :  { %s624_s14 = smov 0   ;;  %s698_s0 = inlined_call_operand.vmem [shape: f32[256,48], index: 0, kind: input, shape index: {}]   ;;  %s699_s1 = inlined_call_operand.vmem [shape: f32[48,128], index: 1, kind: input, shape index: {}]   ;;  %s700_s2 = inlined_call_operand.<no memory space> [shape: f32[1,1], index: 2, kind: input, shape index: {}]   ;;  %s701_s3 = inlined_call_operand.vmem [shape: f32[1,256], index: 3, kind: output, shape index: {}]  }
   0x1   :  { %8 = sst [smem:[#allocation2]] %s700_s2 }
   0x2 LB: > { %s630_s15 = sadd.s32 4294967295, %s599_s14   ;;  %p494_p0 = scmp.ge.s32.totalorder %s599_s14, 1  ;;  %s599_s14 = sphi %s624_s14, %s14_s14  }
   0x3   : > { %p139_p1 = scmp.lt.s32.totalorder %s599_s14, 3 }
   0x5   : > { %p140_p2 = pnand %p494_p0, %p139_p1 }
   0x6   : > { %s495_s19 = sshll.u32 (!%p140_p2), %s630_s15, 4  ;;  %s192_s5 = sld [smem:[#allocation2]] (!%p140_p2) }
   0x7   : > { %143 = sbr.rel (%p140_p2) target bundleno = 380 (0x17c), region = 32  ;;  %p162_p3 = scmp.lt.s32.totalorder (!%p140_p2), %s495_s19, 31 }
   0x8   : > { %p167_p4 = scmp.lt.s32.totalorder (!%p140_p2), %s630_s15, 1 }
   0xc   : > { %v191_v0 = vld [vmem:[%s699_s1 + $0x28] sm:$0xff]  ;;  %v190_v1 = vld [vmem:[%s699_s1 + $0x20] sm:$0xff]  ;;  %v189_v2 = vld [vmem:[%s699_s1 + $0x18] sm:$0xff]  ;;  %s703_s19 = smov (!%p162_p3, %s495_s19), 31  ;;  %vm193_vm0 = vcmask 392192   ;;  %v437_v59 = vstv %s192_s5  ;;  %s705_s15 = smov (!%p167_p4, %s630_s15), 1 }
   0xd   : > { %537 = vmatprep.subr.mxu0 %v191_v0  ;;  %573 = vmatprep.subr.mxu1 %v191_v0  ;;  %v188_v3 = vld [vmem:[%s699_s1 + $0x10] sm:$0xff]  ;;  %s496_s24 = sshll.u32 %s703_s19, 3  ;;  %v187_v4 = vld [vmem:[%s699_s1 + $0x8] sm:$0xff]  ;;  %v186_v6 = vld [vmem:[%s699_s1] sm:$0xff]  ;;  %s169_s8 = scalar_lea.vmem %s701_s3, %s705_s15 }
   0xe   : > { %538 = vmatpush3.msra.mxu0 %v191_v0  ;;  %579 = vmatpush3.msra.mxu1 %v191_v0  ;;  %s653_s29 = scalar_lea.vmem %s698_s0, %s496_s24 }
   0xf   : > { %539 = vmatprep.subr.mxu0 %v190_v1  ;;  %574 = vmatprep.subr.mxu1 %v190_v1  ;;  %v170_v5 = vld [vmem:[%s653_s29] sm:$0xff]  ;;  %v171_v7 = vld [vmem:[%s653_s29 + $0x8] sm:$0xff]  ;;  %v172_v8 = vld [vmem:[%s653_s29 + $0x10] sm:$0xff] }
  0x10   : > { %540 = vmatpush3.msra.mxu0 %v190_v1  ;;  %580 = vmatpush3.msra.mxu1 %v190_v1  ;;  %v178_v9 = vld [vmem:[%s653_s29 + $0x40] sm:$0xff]  ;;  %v179_v10 = vld [vmem:[%s653_s29 + $0x48] sm:$0xff]  ;;  %v180_v11 = vld [vmem:[%s653_s29 + $0x50] sm:$0xff] }
  0x11   : > { %541 = vmatprep.subr.mxu0 %v189_v2  ;;  %575 = vmatprep.subr.mxu1 %v189_v2  ;;  %v173_v12 = vld [vmem:[%s653_s29 + $0x18] sm:$0xff]  ;;  %v174_v13 = vld [vmem:[%s653_s29 + $0x20] sm:$0xff]  ;;  %v175_v16 = vld [vmem:[%s653_s29 + $0x28] sm:$0xff] }
  0x12   : > { %542 = vmatpush3.msra.mxu0 %v189_v2  ;;  %581 = vmatpush3.msra.mxu1 %v189_v2  ;;  %v181_v14 = vld [vmem:[%s653_s29 + $0x58] sm:$0xff]  ;;  %v182_v15 = vld [vmem:[%s653_s29 + $0x60] sm:$0xff]  ;;  %v176_v17 = vld [vmem:[%s653_s29 + $0x30] sm:$0xff] }
  0x13   : > { %543 = vmatprep.subr.mxu0 %v188_v3  ;;  %576 = vmatprep.subr.mxu1 %v188_v3  ;;  %v183_v18 = vld [vmem:[%s653_s29 + $0x68] sm:$0xff]  ;;  %v184_v19 = vld [vmem:[%s653_s29 + $0x70] sm:$0xff]  ;;  %v177_v20 = vld [vmem:[%s653_s29 + $0x38] sm:$0xff] }
  0x14   : > { %544 = vmatpush3.msra.mxu0 %v188_v3  ;;  %549 = vmatprep.mubr.msk.f32.mxu0 %vm193_vm0, %v170_v5  ;;  %v185_v21 = vld [vmem:[%s653_s29 + $0x78] sm:$0xff] }
  0x15   : > { %545 = vmatprep.subr.mxu0 %v187_v4  ;;  %582 = vmatpush3.msra.mxu1 %v188_v3 }
  0x16   : > { %546 = vmatpush3.msra.mxu0 %v187_v4  ;;  %577 = vmatprep.subr.mxu1 %v187_v4 }
  0x17   : > { %547 = vmatprep.subr.mxu0 %v186_v6  ;;  %583 = vmatpush3.msra.mxu1 %v187_v4 }
  0x18   : > { %548 = vmatpush3.msra.mxu0 %v186_v6  ;;  %578 = vmatprep.subr.mxu1 %v186_v6 }
  0x19   : > { %550 = vmatmul.mubr.msk.f32.vlgmr.msra.gmra.mxu0 %vm193_vm0, %v171_v7  ;;  %584 = vmatpush3.msra.mxu1 %v186_v6 }
  0x1a   : > { %552 = vmatprep.mubr.msk.f32.mxu0 %vm193_vm0, %v172_v8  ;;  %561 = vmatprep.mubr.msk.f32.mxu1 %vm193_vm0, %v178_v9 }
  0x1b   : > { %562 = vmatmul.mubr.msk.f32.vlgmr.msra.gmra.mxu1 %vm193_vm0, %v179_v10 }
  0x1c   : > { %564 = vmatprep.mubr.msk.f32.mxu1 %vm193_vm0, %v180_v11 }
  0x1d   : > { %553 = vmatmul.mubr.msk.f32.gmra.mxu0 %vm193_vm0, %v173_v12 }
  0x1e   : > { %555 = vmatprep.mubr.msk.f32.mxu0 %vm193_vm0, %v174_v13 }
  0x1f   : > { %565 = vmatmul.mubr.msk.f32.gmra.mxu1 %vm193_vm0, %v181_v14 }
  0x20   : > { %567 = vmatprep.mubr.msk.f32.mxu1 %vm193_vm0, %v182_v15 }
  0x21   : > { %556 = vmatmul.mubr.msk.f32.gmra.mxu0 %vm193_vm0, %v175_v16 }
  0x22   : > { %558 = vmatprep.mubr.msk.f32.mxu0 %vm193_vm0, %v176_v17 }
  0x23   : > { %568 = vmatmul.mubr.msk.f32.gmra.mxu1 %vm193_vm0, %v183_v18 }
  0x24   : > { %570 = vmatprep.mubr.msk.f32.mxu1 %vm193_vm0, %v184_v19 }
  0x25   : > { %559 = vmatmul.mubr.msk.f32.gmra.mxu0 %vm193_vm0, %v177_v20 }
  0x27   : > { %571 = vmatmul.mubr.msk.f32.gmra.mxu1 %vm193_vm0, %v185_v21 }
  0xd9   : > { %v551_v22 = vpop.f32.mrf.mxu0 }
  0xdb   : > { %v308_v23 = vpop.f32.mrf.mxu0  ;;  %v563_v30 = vpop.f32.mrf.mxu1 }
  0xdc   : > { %387 = vxpose.xlu0.b32.start [1/16] (narrow) %v308_v23, 40 }
  0xdd   : > { %v554_v24 = vpop.f32.mrf.mxu0  ;;  %v348_v31 = vpop.f32.mrf.mxu1 }
  0xdf   : > { %v318_v25 = vpop.f32.mrf.mxu0  ;;  %v566_v32 = vpop.f32.mrf.mxu1 }
  0xe0   : > { %388 = vxpose.xlu0.b32.cont [2/16] (narrow) %v551_v22, 40 }
  0xe1   : > { %v557_v26 = vpop.f32.mrf.mxu0  ;;  %v358_v33 = vpop.f32.mrf.mxu1 }
  0xe3   : > { %v328_v27 = vpop.f32.mrf.mxu0  ;;  %v569_v34 = vpop.f32.mrf.mxu1 }
  0xe4   : > { %389 = vxpose.xlu0.b32.cont [3/16] (narrow) %v318_v25, 40 }
  0xe5   : > { %v560_v28 = vpop.f32.mrf.mxu0  ;;  %v368_v35 = vpop.f32.mrf.mxu1 }
  0xe7   : > { %v338_v29 = vpop.f32.mrf.mxu0  ;;  %v572_v36 = vpop.f32.mrf.mxu1 }
  0xe8   : > { %390 = vxpose.xlu0.b32.cont [4/16] (narrow) %v554_v24, 40 }
  0xe9   : > { %v378_v37 = vpop.f32.mrf.mxu1 }
  0xec   : > { %391 = vxpose.xlu0.b32.cont [5/16] (narrow) %v328_v27, 40 }
  0xf0   : > { %392 = vxpose.xlu0.b32.cont [6/16] (narrow) %v557_v26, 40 }
  0xf4   : > { %393 = vxpose.xlu0.b32.cont [7/16] (narrow) %v338_v29, 40 }
  0xf8   : > { %394 = vxpose.xlu0.b32.cont [8/16] (narrow) %v560_v28, 40 }
  0xfc   : > { %395 = vxpose.xlu0.b32.cont [9/16] (narrow) %v348_v31, 40 }
 0x100   : > { %396 = vxpose.xlu0.b32.cont [10/16] (narrow) %v563_v30, 40 }
 0x104   : > { %397 = vxpose.xlu0.b32.cont [11/16] (narrow) %v358_v33, 40 }
 0x108   : > { %398 = vxpose.xlu0.b32.cont [12/16] (narrow) %v566_v32, 40 }
 0x10c   : > { %399 = vxpose.xlu0.b32.cont [13/16] (narrow) %v368_v35, 40 }
 0x110   : > { %400 = vxpose.xlu0.b32.cont [14/16] (narrow) %v569_v34, 40 }
 0x114   : > { %401 = vxpose.xlu0.b32.cont [15/16] (narrow) %v378_v37, 40 }
 0x118   : > { %402 = vxpose.xlu0.b32.end [16/16] (narrow) %v572_v36, 40 }
 0x158   : > { %v403_v38 = vpop.trf.xlu0 }
 0x159   : > { %v419_v39 = vmul.f32 %v403_v38, %v403_v38 }
 0x15b   : > { %v423_v41 = vrot.slane %v419_v39, 4 }
 0x15c   : > { %v404_v40 = vpop.trf.xlu0 }
 0x15d   : > { %v424_v44 = vadd.f32 %v423_v41, %v419_v39  ;;  %v420_v45 = vmul.f32 %v404_v40, %v404_v40 }
 0x15f   : > { %v425_v49 = vrot.slane %v424_v44, 2 }
 0x160   : > { %v405_v42 = vpop.trf.xlu0 }
 0x161   : > { %v421_v43 = vmul.f32 %v405_v42, %v405_v42  ;;  %v426_v52 = vadd.f32 %v425_v49, %v424_v44 }
 0x163   : > { %v429_v47 = vadd.f32 %v421_v43, %v420_v45  ;;  %v427_v55 = vrot.slane %v426_v52, 1 }
 0x164   : > { %v406_v46 = vpop.trf.xlu0 }
 0x165   : > { %v422_v48 = vmul.f32 %v406_v46, %v406_v46  ;;  %v428_v60 = vadd.f32 %v427_v55, %v426_v52 }
 0x167   : > { %v430_v50 = vadd.f32 %v429_v47, %v422_v48 }
 0x168   : > { %v407_v58 = vpop.trf.xlu0 }
 0x169   : > { %v431_v51 = vrot.slane %v430_v50, 4  ;;  %v438_v62 = vadd.f32 %v437_v59, %v407_v58 }
 0x16b   : > { %v432_v53 = vadd.f32 %v431_v51, %v430_v50 }
 0x16d   : > { %v433_v54 = vrot.slane %v432_v53, 2 }
 0x16f   : > { %v434_v56 = vadd.f32 %v433_v54, %v432_v53 }
 0x171   : > { %v435_v57 = vrot.slane %v434_v56, 1 }
 0x173   : > { %v436_v61 = vadd.f32 %v435_v57, %v434_v56 }
 0x175   : > { %v439_v63 = vsub.f32 %v428_v60, %v436_v61 }
 0x177   : > { %v440_v0 = vmul.f32 0.5, %v439_v63 }
 0x179   : > { %v441_v1 = vadd.f32 %v440_v0, %v438_v62 }
 0x17b   : > { %442 = vst [vmem:[%s169_s8] sm:$0x1] %v441_v1 }
 0x17c PF: > { %s14_s14 = sadd.s32 1, %s599_s14  }
 0x17d   : > { %p11_p5 = scmp.ge.s32.totalorder %s14_s14, 4  }
 0x17f   :  { %13 = sbr.rel (!%p11_p5) target bundleno = 2 (0x2), region = 62 }

</bundles_post_ra>
